<compile_context>
chip_gen: v5e
topology: v5e:2x2
jax: 0.10.0
libtpu: 0.0.40
codegen_flags: <defaults>
</compile_context>

<pallas_src>
import jax
import jax.numpy as jnp
from jax.experimental import pallas as pl
from jax.experimental.pallas import tpu as pltpu

_LANE = 128   # Q tile on the lane axis


# --------------------------------------------------------------------------
# Pallas kernel: per-query sigmoid-BCE (mean over points), dice loss,
# box L1 and (1 - GIoU).  Layout: points [P, QT], boxes packed [8, QT],
# output packed [8, QT] (rows 0..3 = bce, dice, l1, giou).
# --------------------------------------------------------------------------
def _criterion_kernel(logits_ref, labels_ref, box_ref, out_ref):
    x = logits_ref[...]                                   # [P, QT] mask logits
    z = labels_ref[...]                                   # [P, QT] mask labels

    # --- BCE-with-logits + stable sigmoid, sharing a single exp(-|x|) ---
    e = jnp.exp(-jnp.abs(x))                              # one EUP exp per elem
    bce = jnp.maximum(x, 0.0) - x * z + jnp.log1p(e)
    bce_mean = jnp.mean(bce, axis=0, keepdims=True)       # [1, QT]

    inv_1pe = pl.reciprocal(1.0 + e, approx=True)         # 1 / (1 + e)
    p = jnp.where(x >= 0.0, inv_1pe, e * inv_1pe)         # stable sigmoid(x)

    # --- dice loss (per query) ---
    numer = 2.0 * jnp.sum(p * z, axis=0, keepdims=True)
    denom = jnp.sum(p, axis=0, keepdims=True) + jnp.sum(z, axis=0, keepdims=True)
    dice = 1.0 - (numer + 1.0) * pl.reciprocal(denom + 1.0, approx=True)  # [1, QT]

    # --- box losses (lane-parallel across Q) ---
    b = box_ref[...]                                      # [8, QT]
    sb = b[0:4, :]                                        # src cx, cy, w, h
    tb = b[4:8, :]                                        # tgt cx, cy, w, h
    l1 = jnp.sum(jnp.abs(sb - tb), axis=0, keepdims=True)  # [1, QT]

    eps = 1e-7
    scx, scy = b[0:1, :], b[1:2, :]
    sw = jnp.maximum(b[2:3, :], 0.0)
    sh = jnp.maximum(b[3:4, :], 0.0)
    tcx, tcy = b[4:5, :], b[5:6, :]
    tw = jnp.maximum(b[6:7, :], 0.0)
    th = jnp.maximum(b[7:8, :], 0.0)

    sx0, sy0, sx1, sy1 = scx - 0.5 * sw, scy - 0.5 * sh, scx + 0.5 * sw, scy + 0.5 * sh
    tx0, ty0, tx1, ty1 = tcx - 0.5 * tw, tcy - 0.5 * th, tcx + 0.5 * tw, tcy + 0.5 * th
    area_s = sw * sh
    area_t = tw * th

    ix0 = jnp.maximum(sx0, tx0)
    iy0 = jnp.maximum(sy0, ty0)
    ix1 = jnp.minimum(sx1, tx1)
    iy1 = jnp.minimum(sy1, ty1)
    inter = jnp.maximum(ix1 - ix0, 0.0) * jnp.maximum(iy1 - iy0, 0.0)
    union = area_s + area_t - inter
    iou = inter * pl.reciprocal(union + eps, approx=True)

    ex0 = jnp.minimum(sx0, tx0)
    ey0 = jnp.minimum(sy0, ty0)
    ex1 = jnp.maximum(sx1, tx1)
    ey1 = jnp.maximum(sy1, ty1)
    earea = (ex1 - ex0) * (ey1 - ey0)
    giou = iou - (earea - union) * pl.reciprocal(earea + eps, approx=True)
    giou_loss = 1.0 - giou                                # [1, QT]

    pad = jnp.zeros_like(bce_mean)
    out_ref[...] = jnp.concatenate(
        [bce_mean, dice, l1, giou_loss, pad, pad, pad, pad], axis=0)   # [8, QT]


def _run_criterion_kernel(point_logits, point_labels, src_boxes, tgt_boxes):
    # point_logits / point_labels: [Q, P];  boxes: [Q, 4] cxcywh
    Q, P = point_logits.shape
    Qp = ((Q + _LANE - 1) // _LANE) * _LANE               # pad Q to lane multiple

    def pad_lanes(a):                                      # [R, Q] -> [R, Qp]
        return jnp.pad(a, ((0, 0), (0, Qp - Q)))

    logits_t = pad_lanes(point_logits.astype(jnp.float32).T)         # [P, Qp]
    labels_t = pad_lanes(point_labels.astype(jnp.float32).T)         # [P, Qp]
    boxes_pk = pad_lanes(jnp.concatenate(
        [src_boxes.astype(jnp.float32).T, tgt_boxes.astype(jnp.float32).T],
        axis=0))                                                     # [8, Qp]

    out = pl.pallas_call(
        _criterion_kernel,
        out_shape=jax.ShapeDtypeStruct((8, Qp), jnp.float32),
        grid=(Qp // _LANE,),
        in_specs=[
            pl.BlockSpec((P, _LANE), lambda q: (0, q)),
            pl.BlockSpec((P, _LANE), lambda q: (0, q)),
            pl.BlockSpec((8, _LANE), lambda q: (0, q)),
        ],
        out_specs=pl.BlockSpec((8, _LANE), lambda q: (0, q)),
        compiler_params=pltpu.CompilerParams(dimension_semantics=("parallel",)),
    )(logits_t, labels_t, boxes_pk)

    return out[0, :Q], out[1, :Q], out[2, :Q], out[3, :Q]


# --------------------------------------------------------------------------
# Glue: point sampling (gathers) in plain JAX; matches detectron2's
# point_sample (grid_sample bilinear, align_corners=False, zero padding).
# --------------------------------------------------------------------------
def point_sample(inp, coords):
    # inp: [Q, C, H, W]; coords: [Q, P, 2] in [0,1], last dim = (x, y)
    Q, C, H, W = inp.shape
    g = 2.0 * coords - 1.0
    x = ((g[..., 0] + 1.0) * W - 1.0) / 2.0   # [Q, P]
    y = ((g[..., 1] + 1.0) * H - 1.0) / 2.0
    x0 = jnp.floor(x)
    y0 = jnp.floor(y)
    x1 = x0 + 1.0
    y1 = y0 + 1.0
    wx1 = x - x0
    wx0 = 1.0 - wx1
    wy1 = y - y0
    wy0 = 1.0 - wy1

    flat = inp.reshape(Q, C, H * W)

    def gather(ix, iy):
        valid = ((ix >= 0) & (ix <= W - 1) & (iy >= 0) & (iy <= H - 1)).astype(inp.dtype)
        ixc = jnp.clip(ix, 0, W - 1).astype(jnp.int32)
        iyc = jnp.clip(iy, 0, H - 1).astype(jnp.int32)
        idx = (iyc * W + ixc)[:, None, :]                  # [Q, 1, P]
        vals = jnp.take_along_axis(
            flat, jnp.broadcast_to(idx, (Q, C, idx.shape[-1])), axis=2)
        return vals * valid[:, None, :]

    out = (gather(x0, y0) * (wx0 * wy0)[:, None, :]
           + gather(x1, y0) * (wx1 * wy0)[:, None, :]
           + gather(x0, y1) * (wx0 * wy1)[:, None, :]
           + gather(x1, y1) * (wx1 * wy1)[:, None, :])
    return out  # [Q, C, P]


def get_uncertain_point_coords_with_randomness(key, coarse_logits, num_points,
                                               oversample_ratio, importance_sample_ratio):
    # coarse_logits: [Q, 1, H, W]
    num_boxes = coarse_logits.shape[0]
    num_sampled = int(num_points * oversample_ratio)
    k1, k2 = jax.random.split(key)
    point_coords = jax.random.uniform(k1, (num_boxes, num_sampled, 2), dtype=jnp.float32)
    sampled_logits = point_sample(coarse_logits, point_coords)       # [Q, 1, S]
    # calculate_uncertainty(logits) = -|logits|
    point_uncertainties = -jnp.abs(sampled_logits[:, 0, :])
    num_uncertain_points = int(importance_sample_ratio * num_points)
    num_random_points = num_points - num_uncertain_points
    idx = jax.lax.top_k(point_uncertainties, num_uncertain_points)[1]   # [Q, k]
    uncertain_coords = jnp.take_along_axis(point_coords, idx[..., None], axis=1)
    if num_random_points > 0:
        rand_coords = jax.random.uniform(k2, (num_boxes, num_random_points, 2),
                                         dtype=jnp.float32)
        return jnp.concatenate([uncertain_coords, rand_coords], axis=1)
    return uncertain_coords


# --------------------------------------------------------------------------
# SetCriterionReferOne forward (mask_dict is not None path, losses=['masks','boxes'])
# --------------------------------------------------------------------------
class SetCriterionReferOne:
    def __init__(self, num_classes=1, eos_coef=0.1, num_points=128,
                 oversample_ratio=3.0, importance_sample_ratio=0.75,
                 num_mask_tokens=3, iou_loss=True, nms_threshold=0.9):
        self.num_classes = num_classes
        self.eos_coef = eos_coef
        # deterministic buffer init (as in __init__)
        self.empty_weight = jnp.ones((num_classes + 1,), jnp.float32).at[-1].set(eos_coef)
        self.num_points = num_points
        self.oversample_ratio = oversample_ratio
        self.importance_sample_ratio = importance_sample_ratio
        self.focal_alpha = 0.25
        self.num_mask_tokens = num_mask_tokens
        self.iou_loss = iou_loss
        self.nms_threshold = nms_threshold
        # TODO(synk): 'match_content' losses (NMS + Hungarian content_matcher +
        # cross-entropy) have no clean Pallas equivalent and are not implemented.
        # TODO(synk): aux_outputs (per-decoder-layer) losses could be batched into a
        # single pallas_call by stacking layers along the grid axis; single layer here.

    def forward(self, outputs, targets, key):
        # targets: list of length 1 of dicts with 'boxes' [N,4] and 'masks' [N,H,W]
        assert len(targets) == 1
        pred_masks = outputs['pred_masks']   # [1, Q, H, W]
        pred_boxes = outputs['pred_boxes']   # [1, Q, 4]
        pred_ious = outputs['pred_ious']     # [1, N, M]
        tgt_boxes = targets[0]['boxes']      # [N, 4]
        tgt_masks = targets[0]['masks']      # [N, H, W]

        N = tgt_boxes.shape[0]
        M = self.num_mask_tokens
        Q = pred_masks.shape[1]
        assert Q == N * M

        num_masks = float(max(N, 1))  # world_size == 1, clamp(min=1)

        # indices: src = arange(Q), tgt = arange(N).repeat_interleave(M)
        tgt_idx = jnp.repeat(jnp.arange(N), M)

        src_masks = pred_masks[0]                                    # [Q, H, W]
        target_masks = tgt_masks[tgt_idx].astype(src_masks.dtype)    # [Q, H, W]

        # point sampling (no grad in torch; glue here)
        point_coords = get_uncertain_point_coords_with_randomness(
            key, src_masks[:, None], self.num_points,
            self.oversample_ratio, self.importance_sample_ratio)

        # Fused bilinear sampling: src logits + tgt labels share one gather pass.
        stacked = jnp.stack([src_masks, target_masks], axis=1)       # [Q, 2, H, W]
        sampled = point_sample(stacked, point_coords)                # [Q, 2, P]
        point_logits = sampled[:, 0]                                 # [Q, P]
        point_labels = sampled[:, 1]                                 # [Q, P]

        src_boxes = pred_boxes[0]                                    # [Q, 4]
        target_boxes = tgt_boxes[tgt_idx]                            # [Q, 4]

        # ---- Pallas kernel: per-query BCE / dice / L1 / (1-GIoU) ----
        bce_q, dice_q, l1_q, giou_q = _run_criterion_kernel(
            point_logits, point_labels, src_boxes, target_boxes)

        # ---- one-to-one token selection (min over mask tokens) ----
        mask_loss = (bce_q + dice_q).reshape(N, M)
        index = jnp.argmin(mask_loss, axis=1)                        # [N]
        sel = lambda v: jnp.take_along_axis(v.reshape(N, M), index[:, None], axis=1)

        losses = {}
        losses['loss_mask_bce_0'] = sel(bce_q).sum() / num_masks
        dice_sel = sel(dice_q)                                        # [N, 1]
        losses['loss_mask_dice_0'] = dice_sel.sum() / num_masks

        # iou score loss (MSE between selected predicted iou and 1 - dice)
        target_iou = 1.0 - dice_sel
        src_ious = jnp.take_along_axis(pred_ious[0].reshape(N, M), index[:, None], axis=1)
        if self.iou_loss:
            losses['iou_score_loss_0'] = ((src_ious - target_iou) ** 2).sum() / num_masks

        # box losses (use the same selected token index)
        losses['loss_bbox_0'] = sel(l1_q).sum() / num_masks
        losses['loss_giou_0'] = sel(giou_q).sum() / num_masks
        return losses


# --------------------------------------------------------------------------
if __name__ == "__main__":
    key = jax.random.PRNGKey(0)
    k1, k2, k3, k4, k5, k6, k7 = jax.random.split(key, 7)

    N, M, H, W = 2, 3, 16, 16
    Q = N * M

    # synthetic model outputs
    pred_masks = jax.random.normal(k1, (1, Q, H, W), jnp.float32) * 2.0
    wh = jax.random.uniform(k2, (1, Q, 2), jnp.float32, 0.2, 0.6)
    cxcy = jax.random.uniform(k3, (1, Q, 2), jnp.float32, 0.3, 0.7)
    pred_boxes = jnp.concatenate([cxcy, wh], axis=-1)                 # cxcywh
    pred_ious = jax.random.uniform(k4, (1, N, M), jnp.float32)

    # synthetic targets (single image)
    twh = jax.random.uniform(k5, (N, 2), jnp.float32, 0.2, 0.6)
    tcxcy = jax.random.uniform(k7, (N, 2), jnp.float32, 0.3, 0.7)
    tgt_boxes = jnp.concatenate([tcxcy, twh], axis=-1)
    tgt_masks = (jax.random.normal(k6, (N, H, W), jnp.float32) > 0.0).astype(jnp.float32)

    outputs = {'pred_masks': pred_masks, 'pred_boxes': pred_boxes, 'pred_ious': pred_ious}
    targets = [{'boxes': tgt_boxes, 'masks': tgt_masks}]

    criterion = SetCriterionReferOne(
        num_classes=1, eos_coef=0.1, num_points=128, oversample_ratio=3.0,
        importance_sample_ratio=0.75, num_mask_tokens=M, iou_loss=True)

    losses = criterion.forward(outputs, targets, jax.random.PRNGKey(42))
    losses = jax.tree_util.tree_map(jax.block_until_ready, losses)

    for k in sorted(losses):
        v = losses[k]
        assert jnp.isfinite(v), f"non-finite loss {k}"
    print("KERNEL_OK")
</pallas_src>

<mosaic_0001>
module attributes {stable_mosaic.version = 11 : i64} {
  func.func @_criterion_kernel(%arg0: i32, %arg1: memref<128x128xf32, #tpu.memory_space<vmem>>, %arg2: memref<128x128xf32, #tpu.memory_space<vmem>>, %arg3: memref<8x128xf32, #tpu.memory_space<vmem>>, %arg4: memref<8x128xf32, #tpu.memory_space<vmem>>) attributes {dimension_semantics = [#tpu.dimension_semantics<parallel>], iteration_bounds = array<i64: 1>, scalar_prefetch = 0 : i64, scratch_operands = 0 : i64, tpu.core_type = #tpu.core_type<tc>, window_params = [{transform_indices = @transform_0, window_bounds = array<i64: 128, 128>}, {transform_indices = @transform_1, window_bounds = array<i64: 128, 128>}, {transform_indices = @transform_2, window_bounds = array<i64: 8, 128>}, {transform_indices = @transform_3, window_bounds = array<i64: 8, 128>}]} {
    %c0 = arith.constant 0 : index
    %c0_0 = arith.constant 0 : index
    %0 = vector.load %arg1[%c0, %c0_0] : memref<128x128xf32, #tpu.memory_space<vmem>>, vector<128x128xf32>
    %c0_1 = arith.constant 0 : index
    %c0_2 = arith.constant 0 : index
    %1 = vector.load %arg2[%c0_1, %c0_2] : memref<128x128xf32, #tpu.memory_space<vmem>>, vector<128x128xf32>
    %2 = math.absf %0 : vector<128x128xf32>
    %cst = arith.constant 0.000000e+00 : f32
    %3 = vector.broadcast %cst : f32 to vector<128x128xf32>
    %4 = arith.subf %3, %2 : vector<128x128xf32>
    %5 = math.exp %4 : vector<128x128xf32>
    %cst_3 = arith.constant 0.000000e+00 : f32
    %6 = vector.broadcast %cst_3 : f32 to vector<128x128xf32>
    %7 = arith.maximumf %0, %6 : vector<128x128xf32>
    %8 = arith.mulf %0, %1 : vector<128x128xf32>
    %9 = arith.subf %7, %8 : vector<128x128xf32>
    %10 = math.log1p %5 : vector<128x128xf32>
    %11 = arith.addf %9, %10 : vector<128x128xf32>
    %cst_4 = arith.constant dense<0.000000e+00> : vector<128xf32>
    %12 = vector.multi_reduction <add>, %11, %cst_4 [0] : vector<128x128xf32> to vector<128xf32>
    %13 = vector.shape_cast %12 : vector<128xf32> to vector<1x128xf32>
    %cst_5 = arith.constant 1.280000e+02 : f32
    %14 = vector.broadcast %cst_5 : f32 to vector<1x128xf32>
    %15 = arith.divf %13, %14 : vector<1x128xf32>
    %cst_6 = arith.constant 1.000000e+00 : f32
    %16 = vector.broadcast %cst_6 : f32 to vector<128x128xf32>
    %17 = arith.addf %16, %5 : vector<128x128xf32>
    %18 = tpu.reciprocal %17 {approx = true} : vector<128x128xf32> -> vector<128x128xf32>
    %cst_7 = arith.constant 0.000000e+00 : f32
    %19 = vector.broadcast %cst_7 : f32 to vector<128x128xf32>
    %20 = arith.cmpf oge, %0, %19 : vector<128x128xf32>
    %21 = arith.mulf %5, %18 : vector<128x128xf32>
    %22 = arith.select %20, %18, %21 : vector<128x128xi1>, vector<128x128xf32>
    %23 = arith.mulf %22, %1 : vector<128x128xf32>
    %cst_8 = arith.constant dense<0.000000e+00> : vector<128xf32>
    %24 = vector.multi_reduction <add>, %23, %cst_8 [0] : vector<128x128xf32> to vector<128xf32>
    %25 = vector.shape_cast %24 : vector<128xf32> to vector<1x128xf32>
    %cst_9 = arith.constant 2.000000e+00 : f32
    %26 = vector.broadcast %cst_9 : f32 to vector<1x128xf32>
    %27 = arith.mulf %26, %25 : vector<1x128xf32>
    %cst_10 = arith.constant dense<0.000000e+00> : vector<128xf32>
    %28 = vector.multi_reduction <add>, %22, %cst_10 [0] : vector<128x128xf32> to vector<128xf32>
    %29 = vector.shape_cast %28 : vector<128xf32> to vector<1x128xf32>
    %cst_11 = arith.constant dense<0.000000e+00> : vector<128xf32>
    %30 = vector.multi_reduction <add>, %1, %cst_11 [0] : vector<128x128xf32> to vector<128xf32>
    %31 = vector.shape_cast %30 : vector<128xf32> to vector<1x128xf32>
    %32 = arith.addf %29, %31 : vector<1x128xf32>
    %cst_12 = arith.constant 1.000000e+00 : f32
    %33 = vector.broadcast %cst_12 : f32 to vector<1x128xf32>
    %34 = arith.addf %27, %33 : vector<1x128xf32>
    %cst_13 = arith.constant 1.000000e+00 : f32
    %35 = vector.broadcast %cst_13 : f32 to vector<1x128xf32>
    %36 = arith.addf %32, %35 : vector<1x128xf32>
    %37 = tpu.reciprocal %36 {approx = true} : vector<1x128xf32> -> vector<1x128xf32>
    %38 = arith.mulf %34, %37 : vector<1x128xf32>
    %cst_14 = arith.constant 1.000000e+00 : f32
    %39 = vector.broadcast %cst_14 : f32 to vector<1x128xf32>
    %40 = arith.subf %39, %38 : vector<1x128xf32>
    %c0_15 = arith.constant 0 : index
    %c0_16 = arith.constant 0 : index
    %41 = vector.load %arg3[%c0_15, %c0_16] : memref<8x128xf32, #tpu.memory_space<vmem>>, vector<8x128xf32>
    %42 = vector.extract_strided_slice %41 {offsets = [0, 0], sizes = [4, 128], strides = [1, 1]} : vector<8x128xf32> to vector<4x128xf32>
    %43 = vector.extract_strided_slice %41 {offsets = [4, 0], sizes = [4, 128], strides = [1, 1]} : vector<8x128xf32> to vector<4x128xf32>
    %44 = arith.subf %42, %43 : vector<4x128xf32>
    %45 = math.absf %44 : vector<4x128xf32>
    %cst_17 = arith.constant dense<0.000000e+00> : vector<128xf32>
    %46 = vector.multi_reduction <add>, %45, %cst_17 [0] : vector<4x128xf32> to vector<128xf32>
    %47 = vector.shape_cast %46 : vector<128xf32> to vector<1x128xf32>
    %48 = vector.extract_strided_slice %41 {offsets = [0, 0], sizes = [1, 128], strides = [1, 1]} : vector<8x128xf32> to vector<1x128xf32>
    %49 = vector.extract_strided_slice %41 {offsets = [1, 0], sizes = [1, 128], strides = [1, 1]} : vector<8x128xf32> to vector<1x128xf32>
    %50 = vector.extract_strided_slice %41 {offsets = [2, 0], sizes = [1, 128], strides = [1, 1]} : vector<8x128xf32> to vector<1x128xf32>
    %cst_18 = arith.constant 0.000000e+00 : f32
    %51 = vector.broadcast %cst_18 : f32 to vector<1x128xf32>
    %52 = arith.maximumf %50, %51 : vector<1x128xf32>
    %53 = vector.extract_strided_slice %41 {offsets = [3, 0], sizes = [1, 128], strides = [1, 1]} : vector<8x128xf32> to vector<1x128xf32>
    %cst_19 = arith.constant 0.000000e+00 : f32
    %54 = vector.broadcast %cst_19 : f32 to vector<1x128xf32>
    %55 = arith.maximumf %53, %54 : vector<1x128xf32>
    %56 = vector.extract_strided_slice %41 {offsets = [4, 0], sizes = [1, 128], strides = [1, 1]} : vector<8x128xf32> to vector<1x128xf32>
    %57 = vector.extract_strided_slice %41 {offsets = [5, 0], sizes = [1, 128], strides = [1, 1]} : vector<8x128xf32> to vector<1x128xf32>
    %58 = vector.extract_strided_slice %41 {offsets = [6, 0], sizes = [1, 128], strides = [1, 1]} : vector<8x128xf32> to vector<1x128xf32>
    %cst_20 = arith.constant 0.000000e+00 : f32
    %59 = vector.broadcast %cst_20 : f32 to vector<1x128xf32>
    %60 = arith.maximumf %58, %59 : vector<1x128xf32>
    %61 = vector.extract_strided_slice %41 {offsets = [7, 0], sizes = [1, 128], strides = [1, 1]} : vector<8x128xf32> to vector<1x128xf32>
    %cst_21 = arith.constant 0.000000e+00 : f32
    %62 = vector.broadcast %cst_21 : f32 to vector<1x128xf32>
    %63 = arith.maximumf %61, %62 : vector<1x128xf32>
    %cst_22 = arith.constant 5.000000e-01 : f32
    %64 = vector.broadcast %cst_22 : f32 to vector<1x128xf32>
    %65 = arith.mulf %64, %52 : vector<1x128xf32>
    %66 = arith.subf %48, %65 : vector<1x128xf32>
    %cst_23 = arith.constant 5.000000e-01 : f32
    %67 = vector.broadcast %cst_23 : f32 to vector<1x128xf32>
    %68 = arith.mulf %67, %55 : vector<1x128xf32>
    %69 = arith.subf %49, %68 : vector<1x128xf32>
    %cst_24 = arith.constant 5.000000e-01 : f32
    %70 = vector.broadcast %cst_24 : f32 to vector<1x128xf32>
    %71 = arith.mulf %70, %52 : vector<1x128xf32>
    %72 = arith.addf %48, %71 : vector<1x128xf32>
    %cst_25 = arith.constant 5.000000e-01 : f32
    %73 = vector.broadcast %cst_25 : f32 to vector<1x128xf32>
    %74 = arith.mulf %73, %55 : vector<1x128xf32>
    %75 = arith.addf %49, %74 : vector<1x128xf32>
    %cst_26 = arith.constant 5.000000e-01 : f32
    %76 = vector.broadcast %cst_26 : f32 to vector<1x128xf32>
    %77 = arith.mulf %76, %60 : vector<1x128xf32>
    %78 = arith.subf %56, %77 : vector<1x128xf32>
    %cst_27 = arith.constant 5.000000e-01 : f32
    %79 = vector.broadcast %cst_27 : f32 to vector<1x128xf32>
    %80 = arith.mulf %79, %63 : vector<1x128xf32>
    %81 = arith.subf %57, %80 : vector<1x128xf32>
    %cst_28 = arith.constant 5.000000e-01 : f32
    %82 = vector.broadcast %cst_28 : f32 to vector<1x128xf32>
    %83 = arith.mulf %82, %60 : vector<1x128xf32>
    %84 = arith.addf %56, %83 : vector<1x128xf32>
    %cst_29 = arith.constant 5.000000e-01 : f32
    %85 = vector.broadcast %cst_29 : f32 to vector<1x128xf32>
    %86 = arith.mulf %85, %63 : vector<1x128xf32>
    %87 = arith.addf %57, %86 : vector<1x128xf32>
    %88 = arith.mulf %52, %55 : vector<1x128xf32>
    %89 = arith.mulf %60, %63 : vector<1x128xf32>
    %90 = arith.maximumf %66, %78 : vector<1x128xf32>
    %91 = arith.maximumf %69, %81 : vector<1x128xf32>
    %92 = arith.minimumf %72, %84 : vector<1x128xf32>
    %93 = arith.minimumf %75, %87 : vector<1x128xf32>
    %94 = arith.subf %92, %90 : vector<1x128xf32>
    %cst_30 = arith.constant 0.000000e+00 : f32
    %95 = vector.broadcast %cst_30 : f32 to vector<1x128xf32>
    %96 = arith.maximumf %94, %95 : vector<1x128xf32>
    %97 = arith.subf %93, %91 : vector<1x128xf32>
    %cst_31 = arith.constant 0.000000e+00 : f32
    %98 = vector.broadcast %cst_31 : f32 to vector<1x128xf32>
    %99 = arith.maximumf %97, %98 : vector<1x128xf32>
    %100 = arith.mulf %96, %99 : vector<1x128xf32>
    %101 = arith.addf %88, %89 : vector<1x128xf32>
    %102 = arith.subf %101, %100 : vector<1x128xf32>
    %cst_32 = arith.constant 1.000000e-07 : f32
    %103 = vector.broadcast %cst_32 : f32 to vector<1x128xf32>
    %104 = arith.addf %102, %103 : vector<1x128xf32>
    %105 = tpu.reciprocal %104 {approx = true} : vector<1x128xf32> -> vector<1x128xf32>
    %106 = arith.mulf %100, %105 : vector<1x128xf32>
    %107 = arith.minimumf %66, %78 : vector<1x128xf32>
    %108 = arith.minimumf %69, %81 : vector<1x128xf32>
    %109 = arith.maximumf %72, %84 : vector<1x128xf32>
    %110 = arith.maximumf %75, %87 : vector<1x128xf32>
    %111 = arith.subf %109, %107 : vector<1x128xf32>
    %112 = arith.subf %110, %108 : vector<1x128xf32>
    %113 = arith.mulf %111, %112 : vector<1x128xf32>
    %114 = arith.subf %113, %102 : vector<1x128xf32>
    %cst_33 = arith.constant 1.000000e-07 : f32
    %115 = vector.broadcast %cst_33 : f32 to vector<1x128xf32>
    %116 = arith.addf %113, %115 : vector<1x128xf32>
    %117 = tpu.reciprocal %116 {approx = true} : vector<1x128xf32> -> vector<1x128xf32>
    %118 = arith.mulf %114, %117 : vector<1x128xf32>
    %119 = arith.subf %106, %118 : vector<1x128xf32>
    %cst_34 = arith.constant 1.000000e+00 : f32
    %120 = vector.broadcast %cst_34 : f32 to vector<1x128xf32>
    %121 = arith.subf %120, %119 : vector<1x128xf32>
    %cst_35 = arith.constant 0.000000e+00 : f32
    %122 = vector.broadcast %cst_35 : f32 to vector<1x128xf32>
    %123 = tpu.concatenate %15, %40, %47, %121, %122, %122, %122, %122 in 0 : vector<1x128xf32>, vector<1x128xf32>, vector<1x128xf32>, vector<1x128xf32>, vector<1x128xf32>, vector<1x128xf32>, vector<1x128xf32>, vector<1x128xf32> -> vector<8x128xf32>
    %c0_36 = arith.constant 0 : index
    %c0_37 = arith.constant 0 : index
    %124 = vector.load %arg4[%c0_36, %c0_37] : memref<8x128xf32, #tpu.memory_space<vmem>>, vector<8x128xf32>
    tpu.vector_store %arg4[%c0_36, %c0_37], %123 {strides = array<i32>} : memref<8x128xf32, #tpu.memory_space<vmem>>, vector<8x128xf32>,
    return
  }
  func.func @transform_0(%arg0: i32) -> (i32, i32) {
    %c0_i32 = arith.constant 0 : i32
    %c0_i32_0 = arith.constant 0 : i32
    return %c0_i32, %arg0 : i32, i32
  }
  func.func @transform_1(%arg0: i32) -> (i32, i32) {
    %c0_i32 = arith.constant 0 : i32
    %c0_i32_0 = arith.constant 0 : i32
    return %c0_i32, %arg0 : i32, i32
  }
  func.func @transform_2(%arg0: i32) -> (i32, i32) {
    %c0_i32 = arith.constant 0 : i32
    %c0_i32_0 = arith.constant 0 : i32
    return %c0_i32, %arg0 : i32, i32
  }
  func.func @transform_3(%arg0: i32) -> (i32, i32) {
    %c0_i32 = arith.constant 0 : i32
    %c0_i32_0 = arith.constant 0 : i32
    return %c0_i32, %arg0 : i32, i32
  }
}

</mosaic_0001>

<bundles_post_ra>
// kernel: tpu_custom_call.1
= control target key start
LH: loop header
LB: loop body
LE: loop exit
PB: predicated region body
PF: predicated region fallthrough
CT: control target
= control target key end

     0   :  { %8 = vsyncpa [#allocation3], 0  ;;  %s1596_s0 = inlined_call_operand.hbm [shape: f32[128,128], index: 0, kind: input, shape index: {}]   ;;  %s1597_s1 = inlined_call_operand.hbm [shape: f32[128,128], index: 1, kind: input, shape index: {}]   ;;  %s1598_s2 = inlined_call_operand.hbm [shape: f32[8,128], index: 2, kind: input, shape index: {}]   ;;  %s1599_s3 = inlined_call_operand.hbm [shape: f32[8,128], index: 3, kind: output, shape index: {}]  }
   0x1   :  { %9 = vsyncpa [#allocation6], 0 }
   0x2   :  { %10 = vsyncpa [#allocation4], 0  ;;  %s28_s14 = sshll.u32 %s1597_s1, 4  ;;  %s876_s15 = smov [#allocation5]   ;;  %s29_s14 = int_to_ptr.hbm [resolvable:$true] %s28_s14 }
   0x3   :  { %s30_s16 = sshll.u32 %s876_s15, 4  ;;  %s15_s19 = sshll.u32 %s1596_s0, 4  ;;  %s31_s16 = int_to_ptr.vmem [resolvable:$true] %s30_s16  ;;  %s16_s19 = int_to_ptr.hbm [resolvable:$true] %s15_s19 }
   0x4   :  { %s877_s20 = smov 128   ;;  %s878_s21 = smov 8  }
   0x5   :  { %36 = dma.hbm_to_vmem [thread:$0]  %s29_s14, 2048, %s31_s16, [#allocation6], %s877_s20, %s877_s20, %s878_s21  }
   0x6   :  { %s879_s22 = smov [#allocation2]   ;;  %s42_s26 = sshll.u32 %s1598_s2, 4  ;;  %s43_s26 = int_to_ptr.hbm [resolvable:$true] %s42_s26 }
   0x7   :  { %s17_s23 = sshll.u32 %s879_s22, 4  ;;  %s880_s1 = smov [#allocation7]   ;;  %s18_s23 = int_to_ptr.vmem [resolvable:$true] %s17_s23 }
   0x8   :  { %23 = dma.hbm_to_vmem [thread:$0]  %s16_s19, 2048, %s18_s23, [#allocation3], %s877_s20, %s877_s20, %s878_s21  }
   0x9   :  { %s44_s27 = sshll.u32 %s880_s1, 4  ;;  %s45_s27 = int_to_ptr.vmem [resolvable:$true] %s44_s27 }
   0xa   :  { %47 = dma.hbm_to_vmem [thread:$0]  %s43_s26, 128, %s45_s27, [#allocation6]  }
   0xb   :  { %870 = dma.done.wait [#allocation3], 2048  }
   0xc   :  { %871 = vsyncadd [#allocation3], 4294965248 }
   0xd   :  { %872 = dma.done.wait [#allocation6], 2176  }
   0xe   :  { %873 = vsyncadd [#allocation6], 4294965120  ;;  %v912_v0 = vld [vmem:[#allocation2] sm:$0xff]  ;;  %v914_v1 = vld [vmem:[#allocation2 + $0x8] sm:$0xff]  ;;  %s882_s0 = smov [#allocation8]   ;;  %s652_s30 = sshll.u32 %s1599_s3, 4  ;;  %s653_s30 = int_to_ptr.hbm [resolvable:$true] %s652_s30 }
   0xf   :  { %1679 = vst [vmem:[#allocation12_spill] sm:$0xff] %v912_v0  ;;  %v916_v2 = vld [vmem:[#allocation2 + $0x10] sm:$0xff]  ;;  %v918_v3 = vld [vmem:[#allocation2 + $0x18] sm:$0xff]  ;;  %v920_v4 = vld [vmem:[#allocation2 + $0x20] sm:$0xff]  ;;  %v92_v5 = vand.u32 2147483647, %v912_v0 }
  0x10   :  { %1680 = vst [vmem:[#allocation13_spill] sm:$0xff] %v914_v1  ;;  %v923_v6 = vld [vmem:[#allocation2 + $0x28] sm:$0xff]  ;;  %v93_v7 = vand.u32 2147483647, %v914_v1  ;;  %v926_v8 = vld [vmem:[#allocation2 + $0x30] sm:$0xff]  ;;  %v930_v11 = vld [vmem:[#allocation2 + $0x38] sm:$0xff] }
  0x11   :  { %1681 = vst [vmem:[#allocation14_spill] sm:$0xff] %v916_v2  ;;  %v94_v9 = vand.u32 2147483647, %v916_v2  ;;  %v95_v10 = vand.u32 2147483647, %v918_v3  ;;  %v932_v12 = vld [vmem:[#allocation2 + $0x40] sm:$0xff] }
  0x12   :  { %1682 = vst [vmem:[#allocation15_spill] sm:$0xff] %v918_v3  ;;  %v96_v13 = vand.u32 2147483647, %v920_v4  ;;  %v936_v15 = vld [vmem:[#allocation2 + $0x48] sm:$0xff]  ;;  %v938_v16 = vld [vmem:[#allocation2 + $0x50] sm:$0xff]  ;;  %v108_v18 = vsub.f32 0.0, %v92_v5 }
  0x13   :  { %1683 = vst [vmem:[#allocation16_spill] sm:$0xff] %v920_v4  ;;  %v97_v17 = vand.u32 2147483647, %v923_v6  ;;  %v942_v20 = vld [vmem:[#allocation2 + $0x58] sm:$0xff]  ;;  %v944_v21 = vld [vmem:[#allocation2 + $0x60] sm:$0xff]  ;;  %v946_v22 = vld [vmem:[#allocation2 + $0x68] sm:$0xff] }
  0x14   :  { %1684 = vst [vmem:[#allocation17_spill] sm:$0xff] %v923_v6  ;;  %v948_v23 = vld [vmem:[#allocation5] sm:$0xff]  ;;  %v950_v24 = vld [vmem:[#allocation5 + $0x8] sm:$0xff]  ;;  %v98_v25 = vand.u32 2147483647, %v926_v8  ;;  %v109_v26 = vsub.f32 0.0, %v93_v7 }
  0x15   :  { %1685 = vst [vmem:[#allocation18_spill] sm:$0xff] %v926_v8  ;;  %v953_v27 = vld [vmem:[#allocation2 + $0x70] sm:$0xff]  ;;  %v957_v29 = vld [vmem:[#allocation5 + $0x18] sm:$0xff]  ;;  %v110_v30 = vsub.f32 0.0, %v94_v9  ;;  %v111_v31 = vsub.f32 0.0, %v95_v10  ;;  %v961_v32 = vmul.f32 %v948_v23, %v912_v0  ;;  %v965_v33 = vmul.f32 %v950_v24, %v914_v1  ;;  %v969_v35 = vld [vmem:[#allocation5 + $0x20] sm:$0xff] }
  0x16   :  { %1686 = vst [vmem:[#allocation19_spill] sm:$0xff] %v930_v11  ;;  %v955_v28 = vld [vmem:[#allocation5 + $0x10] sm:$0xff]  ;;  %v967_v34 = vld [vmem:[#allocation2 + $0x78] sm:$0xff]  ;;  %v971_v36 = vld [vmem:[#allocation5 + $0x28] sm:$0xff]  ;;  %v99_v37 = vand.u32 2147483647, %v930_v11  ;;  %v980_v40 = vmul.f32 %v957_v29, %v918_v3  ;;  %v991_v46 = vmul.f32 %v969_v35, %v920_v4 }
  0x17   :  { %1687 = vst [vmem:[#allocation20_spill] sm:$0xff] %v932_v12  ;;  %v112_v38 = vsub.f32 0.0, %v96_v13  ;;  %v976_v39 = vmul.f32 %v955_v28, %v916_v2  ;;  %v982_v41 = vld [vmem:[#allocation5 + $0x30] sm:$0xff]  ;;  %v984_v42 = vld [vmem:[#allocation5 + $0x38] sm:$0xff]  ;;  %v986_v43 = vld [vmem:[#allocation5 + $0x40] sm:$0xff]  ;;  %v113_v45 = vsub.f32 0.0, %v97_v17  ;;  %v995_v47 = vmul.f32 %v971_v36, %v923_v6 }
  0x18   :  { %1688 = vst [vmem:[#allocation21_spill] sm:$0xff] %v936_v15  ;;  %v100_v44 = vand.u32 2147483647, %v932_v12  ;;  %v997_v48 = vld [vmem:[#allocation5 + $0x48] sm:$0xff]  ;;  %v999_v49 = vld [vmem:[#allocation5 + $0x50] sm:$0xff]  ;;  %v114_v52 = vsub.f32 0.0, %v98_v25  ;;  %v1005_v53 = vmul.f32 %v982_v41, %v926_v8  ;;  %v1012_v57 = vmul.f32 %v984_v42, %v930_v11 }
  0x19   :  { %1689 = vst [vmem:[#allocation22_spill] sm:$0xff] %v938_v16  ;;  %v101_v50 = vand.u32 2147483647, %v936_v15  ;;  %v102_v51 = vand.u32 2147483647, %v938_v16  ;;  %v1018_v61 = vmul.f32 %v986_v43, %v932_v12  ;;  %v115_v62 = vsub.f32 0.0, %v99_v37 }
  0x1a   :  { %1690 = vst [vmem:[#allocation23_spill] sm:$0xff] %v942_v20  ;;  %v103_v54 = vand.u32 2147483647, %v942_v20  ;;  %v104_v55 = vand.u32 2147483647, %v944_v21  ;;  %v1022_v5 = vmul.f32 %v997_v48, %v936_v15  ;;  %v1026_v7 = vmul.f32 %v999_v49, %v938_v16  ;;  %s650_s2 = sshll.u32 %s882_s0, 4  ;;  %s651_s2 = int_to_ptr.vmem [resolvable:$true] %s650_s2 }
  0x1b   :  { %1691 = vst [vmem:[#allocation24_spill] sm:$0xff] %v944_v21  ;;  %v105_v56 = vand.u32 2147483647, %v946_v22  ;;  %v106_v58 = vand.u32 2147483647, %v953_v27  ;;  %v116_v9 = vsub.f32 0.0, %v100_v44 }
  0x1c   :  { %1692 = vst [vmem:[#allocation25_spill] sm:$0xff] %v946_v22  ;;  %v107_v59 = vand.u32 2147483647, %v967_v34  ;;  %v124_v60 = vmul.f32 1.442695, %v108_v18  ;;  %v117_v10 = vsub.f32 0.0, %v101_v50 }
  0x1d   :  { %1693 = vst [vmem:[#allocation26_spill] sm:$0xff] %v948_v23  ;;  %v126_v63 = vmul.f32 1.442695, %v109_v26  ;;  %v118_v13 = vsub.f32 0.0, %v102_v51  ;;  %v128_v17 = vmul.f32 1.442695, %v110_v30 }
  0x1e   :  { %1694 = vst [vmem:[#allocation27_spill] sm:$0xff] %v950_v24  ;;  %v119_v25 = vsub.f32 0.0, %v103_v54  ;;  %v120_v18 = vsub.f32 0.0, %v104_v55  ;;  %v121_v19 = vsub.f32 0.0, %v105_v56  ;;  %v130_v14 = vmul.f32 1.442695, %v111_v31 }
  0x1f   :  { %1695 = vst [vmem:[#allocation28_spill] sm:$0xff] %v953_v27  ;;  %v122_v37 = vsub.f32 0.0, %v106_v58  ;;  %v123_v26 = vsub.f32 0.0, %v107_v59  ;;  %670 = vpow2.f32 %v124_v60  ;;  %v138_v44 = vmul.f32 1.442695, %v115_v62 }
  0x20   :  { %1696 = vst [vmem:[#allocation29_spill] sm:$0xff] %v955_v28  ;;  %672 = vpow2.f32 %v126_v63  ;;  %v140_v30 = vmul.f32 1.442695, %v116_v9  ;;  %v142_v50 = vmul.f32 1.442695, %v117_v10  ;;  %v161_v60 = vmax.f32 %v923_v6, 0.0 }
  0x21   :  { %1697 = vst [vmem:[#allocation30_spill] sm:$0xff] %v957_v29  ;;  %674 = vpow2.f32 %v128_v17  ;;  %v144_v51 = vmul.f32 1.442695, %v118_v13  ;;  %v146_v31 = vmul.f32 1.442695, %v119_v25  ;;  %v163_v62 = vmax.f32 %v930_v11, 0.0 }
  0x22   :  { %1698 = vst [vmem:[#allocation31_spill] sm:$0xff] %v969_v35  ;;  %676 = vpow2.f32 %v130_v14  ;;  %v148_v54 = vmul.f32 1.442695, %v120_v18  ;;  %v150_v55 = vmul.f32 1.442695, %v121_v19  ;;  %v162_v14 = vmax.f32 %v926_v8, 0.0 }
  0x23   :  { %1699 = vst [vmem:[#allocation32_spill] sm:$0xff] %v971_v36  ;;  %v152_v56 = vmul.f32 1.442695, %v122_v37  ;;  %v154_v58 = vmul.f32 1.442695, %v123_v26  ;;  %v164_v19 = vmax.f32 %v932_v12, 0.0 }
  0x24   :  { %1700 = vst [vmem:[#allocation33_spill] sm:$0xff] %v982_v41  ;;  %v136_v41 = vmul.f32 1.442695, %v114_v52  ;;  %v160_v52 = vmax.f32 %v920_v4, 0.0  ;;  %v166_v63 = vmax.f32 %v938_v16, 0.0  ;;  %v1049_v10 = vld [vmem:[#allocation5 + $0x60] sm:$0xff] }
  0x25   :  { %1701 = vst [vmem:[#allocation34_spill] sm:$0xff] %v984_v42  ;;  %v132_v42 = vmul.f32 1.442695, %v112_v38  ;;  %v158_v38 = vmax.f32 %v916_v2, 0.0  ;;  %v1037_v59 = vpop.eup %670  ;;  %v168_v13 = vmax.f32 %v944_v21, 0.0  ;;  %v169_v17 = vmax.f32 %v946_v22, 0.0 }
  0x26   :  { %1702 = vst [vmem:[#allocation35_spill] sm:$0xff] %v986_v43  ;;  %v1028_v43 = vld [vmem:[#allocation5 + $0x58] sm:$0xff]  ;;  %v1056_v18 = vld [vmem:[#allocation5 + $0x68] sm:$0xff]  ;;  %v1058_v37 = vld [vmem:[#allocation5 + $0x70] sm:$0xff]  ;;  %v1724_v24 = vmax.f32 %v953_v27, 0.0 }
  0x27   :  { %1703 = vst [vmem:[#allocation36_spill] sm:$0xff] %v997_v48  ;;  %v134_v48 = vmul.f32 1.442695, %v113_v45  ;;  %678 = vpow2.f32 %v132_v42  ;;  %v159_v45 = vmax.f32 %v918_v3, 0.0  ;;  %v1042_v42 = vpop.eup %672  ;;  %v1060_v26 = vld [vmem:[#allocation5 + $0x78] sm:$0xff]  ;;  %v185_v35 = vmul.f32 %v1056_v18, %v946_v22 }
  0x28   :  { %1704 = vst [vmem:[#allocation37_spill] sm:$0xff] %v999_v49  ;;  %v1032_v49 = vmul.f32 %v1028_v43, %v942_v20  ;;  %v1047_v9 = vpop.eup %674  ;;  %v1074_v29 = vmul.f32 %v1060_v26, %v967_v34 }
  0x29   :  { %1705 = vst [vmem:[#allocation38_spill] sm:$0xff] %v1028_v43  ;;  %680 = vpow2.f32 %v134_v48  ;;  %v165_v48 = vmax.f32 %v936_v15, 0.0  ;;  %v1054_v25 = vpop.eup %676  ;;  %v1716_v43 = vmax.f32 %v912_v0, 0.0 }
  0x2a   :  { %1706 = vst [vmem:[#allocation39_spill] sm:$0xff] %v1037_v59  ;;  %682 = vpow2.f32 %v136_v41  ;;  %v167_v41 = vmax.f32 %v942_v20, 0.0  ;;  %v186_v20 = vmul.f32 %v1058_v37, %v953_v27 }
  0x2b   :  { %1707 = vst [vmem:[#allocation40_spill] sm:$0xff] %v1042_v42  ;;  %684 = vpow2.f32 %v138_v44  ;;  %v1081_v44 = vsub.f32 %v1716_v43, %v961_v32  ;;  %v1100_v32 = vsub.f32 %v161_v60, %v995_v47  ;;  %v1119_v47 = vsub.f32 %v165_v48, %v1022_v5 }
  0x2c   :  { %1708 = vst [vmem:[#allocation41_spill] sm:$0xff] %v1047_v9  ;;  %686 = vpow2.f32 %v140_v30  ;;  %v184_v30 = vmul.f32 %v1049_v10, %v944_v21  ;;  %v1136_v5 = vsub.f32 %v167_v41, %v1032_v49  ;;  %v219_v49 = vand.u32 2147483647, %v1042_v42 }
  0x2d   :  { %1709 = vst [vmem:[#allocation42_spill] sm:$0xff] %v1049_v10  ;;  %688 = vpow2.f32 %v142_v50  ;;  %v1066_v36 = vpop.eup %678  ;;  %v1155_v48 = vadd.f32 1.0, %v1054_v25  ;;  %v1177_v23 = vsub.f32 %v1724_v24, %v186_v20 }
  0x2e   :  { %1710 = vst [vmem:[#allocation43_spill] sm:$0xff] %v1054_v25  ;;  %690 = vpow2.f32 %v144_v51  ;;  %v1717_v51 = vmax.f32 %v914_v1, 0.0  ;;  %v243_v22 = vmul.f32 -0.5, %v1066_v36  ;;  %vm1183_vm1 = vcmp.lt.f32.partialorder %v219_v49, 0.0004427343 }
  0x2f   :  { %1711 = vst [vmem:[#allocation44_spill] sm:$0xff] %v1056_v18  ;;  %v1076_v50 = vpop.eup %680  ;;  %692 = vpow2.f32 %v146_v31  ;;  %v1089_v18 = vsub.f32 %v158_v38, %v976_v39  ;;  %v1097_v31 = vsub.f32 %v160_v52, %v991_v46  ;;  %v1108_v39 = vsub.f32 %v163_v62, %v1012_v57 }
  0x30   :  { %1712 = vst [vmem:[#allocation45_spill] sm:$0xff] %v1058_v37  ;;  %v1086_v10 = vsub.f32 %v1717_v51, %v965_v33  ;;  %v1091_v37 = vpop.eup %682  ;;  %694 = vpow2.f32 %v148_v54  ;;  %v1105_v33 = vsub.f32 %v162_v14, %v1005_v53  ;;  %v1111_v54 = vadd.f32 1.0, %v1037_v59 }
  0x31   :  { %1713 = vst [vmem:[#allocation46_spill] sm:$0xff] %v1060_v26  ;;  %v1094_v26 = vsub.f32 %v159_v45, %v980_v40  ;;  %v1102_v43 = vpop.eup %684  ;;  %696 = vpow2.f32 %v150_v55  ;;  %v1116_v46 = vsub.f32 %v164_v19, %v1018_v61  ;;  %v207_v55 = vmul.f32 -0.5, %v1037_v59 }
  0x32   :  { %1714 = vst [vmem:[#allocation47_spill] sm:$0xff] %v1066_v36  ;;  %v1113_v40 = vpop.eup %686  ;;  %698 = vpow2.f32 %v152_v56  ;;  %v1126_v53 = vadd.f32 1.0, %v1042_v42  ;;  %v216_v57 = vmul.f32 -0.5, %v1042_v42  ;;  %v225_v45 = vmul.f32 -0.5, %v1047_v9 }
  0x33   :  { %1715 = vst [vmem:[#allocation48_spill] sm:$0xff] %v1076_v50  ;;  %v1122_v38 = vpop.eup %688  ;;  %700 = vlog2.f32 %v1111_v54  ;;  %v1133_v61 = vsub.f32 %v166_v63, %v1026_v7  ;;  %v1139_v52 = vadd.f32 1.0, %v1047_v9  ;;  %v1143_v14 = vsub.f32 %v168_v13, %v184_v30 }
  0x34   :  { %1718 = vst [vmem:[#allocation49_spill] sm:$0xff] %v1091_v37  ;;  %v1130_v56 = vpop.eup %690  ;;  %702 = vpow2.f32 %v154_v58  ;;  %v1145_v62 = vsub.f32 %v169_v17, %v185_v35  ;;  %v234_v19 = vmul.f32 -0.5, %v1054_v25  ;;  %v210_v7 = vand.u32 2147483647, %v1037_v59 }
  0x35   :  { %1719 = vst [vmem:[#allocation50_spill] sm:$0xff] %v1102_v43  ;;  %v1141_v60 = vpop.eup %692  ;;  %704 = vlog2.f32 %v1126_v53  ;;  %v208_v41 = vadd.f32 1.0, %v207_v55  ;;  %v217_v35 = vadd.f32 1.0, %v216_v57  ;;  %v226_v13 = vadd.f32 1.0, %v225_v45 }
  0x36   :  { %1720 = vst [vmem:[#allocation51_spill] sm:$0xff] %v1113_v40  ;;  %v1149_v58 = vpop.eup %694  ;;  %706 = vlog2.f32 %v1139_v52  ;;  %v1160_v17 = vadd.f32 1.0, %v1066_v36  ;;  %v228_v51 = vand.u32 2147483647, %v1047_v9  ;;  %v1168_v21 = vadd.f32 1.0, %v1076_v50 }
  0x37   :  { %1721 = vst [vmem:[#allocation52_spill] sm:$0xff] %v1122_v38  ;;  %v1157_v63 = vpop.eup %696  ;;  %708 = vlog2.f32 %v1155_v48  ;;  %v235_v16 = vadd.f32 1.0, %v234_v19  ;;  %v237_v55 = vand.u32 2147483647, %v1054_v25  ;;  %v246_v57 = vand.u32 2147483647, %v1066_v36 }
  0x38   :  { %1722 = vst [vmem:[#allocation53_spill] sm:$0xff] %v1130_v56  ;;  %v1162_v30 = vpop.eup %698  ;;  %710 = vlog2.f32 %v1160_v17  ;;  %vm1179_vm0 = vcmp.lt.f32.partialorder %v210_v7, 0.0004427343  ;;  %v1189_v11 = vmul.f32 %v1037_v59, %v208_v41  ;;  %v1192_v8 = vmul.f32 %v1042_v42, %v217_v35 }
  0x39   :  { %1723 = vst [vmem:[#allocation54_spill] sm:$0xff] %v1141_v60  ;;  %v701_v28 = vpop.eup %700  ;;  %712 = vlog2.f32 %v1168_v21  ;;  %v1195_v20 = vmul.f32 %v1047_v9, %v226_v13  ;;  %v252_v24 = vmul.f32 -0.5, %v1076_v50  ;;  %vm1200_vm2 = vcmp.lt.f32.partialorder %v228_v51, 0.0004427343 }
  0x3a   :  { %v1173_v45 = vpop.eup %702  ;;  %1725 = vst [vmem:[#allocation55_spill] sm:$0xff] %v1177_v23  ;;  %v1198_v27 = vmul.f32 0.6931472, %v701_v28  ;;  %v244_v6 = vadd.f32 1.0, %v243_v22  ;;  %v1205_v4 = vadd.f32 1.0, %v1091_v37  ;;  %v1208_v41 = vmul.f32 %v1054_v25, %v235_v16 }
  0x3b   :  { %v705_v19 = vpop.eup %704  ;;  %vm1210_vm3 = vcmp.lt.f32.partialorder %v237_v55, 0.0004427343  ;;  %vm1214_vm4 = vcmp.lt.f32.partialorder %v246_v57, 0.0004427343  ;;  %v255_v28 = vand.u32 2147483647, %v1076_v50 }
  0x3c   :  { %v707_v7 = vpop.eup %706  ;;  %714 = vlog2.f32 %v1205_v4  ;;  %v261_v22 = vmul.f32 -0.5, %v1091_v37  ;;  %v1222_v9 = vadd.f32 1.0, %v1102_v43  ;;  %v270_v16 = vmul.f32 -0.5, %v1102_v43 }
  0x3d   :  { %v709_v51 = vpop.eup %708  ;;  %v215_v25 = vmul.f32 0.6931472, %v705_v19  ;;  %v1225_v42 = vmul.f32 0.6931472, %v707_v7  ;;  %v253_v57 = vadd.f32 1.0, %v252_v24  ;;  %v1228_v59 = vadd.f32 1.0, %v1113_v40 }
  0x3e   :  { %1736 = vst [vmem:[#allocation56_spill] sm:$0xff] %v1222_v9  ;;  %v711_v55 = vpop.eup %710  ;;  %v212_v2 = vsel %vm1179_vm0, %v1189_v11, %v1198_v27  ;;  %v1235_v1 = vmul.f32 %v1066_v36, %v244_v6  ;;  %716 = vlog2.f32 %v1222_v9  ;;  %v279_v0 = vmul.f32 -0.5, %v1113_v40 }
  0x3f   :  { %1737 = vst [vmem:[#allocation57_spill] sm:$0xff] %v1228_v59  ;;  %v713_v3 = vpop.eup %712  ;;  %v1239_v19 = vmul.f32 0.6931472, %v709_v51  ;;  %vm1241_vm5 = vcmp.lt.f32.partialorder %v255_v28, 0.0004427343  ;;  %718 = vlog2.f32 %v1228_v59  ;;  %v262_v11 = vadd.f32 1.0, %v261_v22 }
  0x40   :  { %v264_v7 = vand.u32 2147483647, %v1091_v37  ;;  %v1247_v23 = vmul.f32 0.6931472, %v711_v55  ;;  %v271_v15 = vadd.f32 1.0, %v270_v16  ;;  %v221_v27 = vsel %vm1183_vm1, %v1192_v8, %v215_v25 }
  0x41   :  { %v273_v6 = vand.u32 2147483647, %v1102_v43  ;;  %v230_v28 = vsel %vm1200_vm2, %v1195_v20, %v1225_v42  ;;  %v1257_v51 = vmul.f32 0.6931472, %v713_v3  ;;  %v1260_v36 = vmul.f32 %v1076_v50, %v253_v57 }
  0x42   :  { %v715_v55 = vpop.eup %714  ;;  %v280_v59 = vadd.f32 1.0, %v279_v0  ;;  %v282_v22 = vand.u32 2147483647, %v1113_v40  ;;  %v288_v16 = vmul.f32 -0.5, %v1122_v38  ;;  %v297_v9 = vmul.f32 -0.5, %v1130_v56 }
  0x43   :  { %v239_v8 = vsel %vm1210_vm3, %v1208_v41, %v1239_v19  ;;  %vm1269_vm6 = vcmp.lt.f32.partialorder %v264_v7, 0.0004427343  ;;  %v1274_v3 = vadd.f32 1.0, %v1122_v38  ;;  %v291_v0 = vand.u32 2147483647, %v1122_v38 }
  0x44   :  { %v717_v42 = vpop.eup %716  ;;  %v248_v25 = vsel %vm1214_vm4, %v1235_v1, %v1247_v23  ;;  %v1282_v20 = vmul.f32 %v1091_v37, %v262_v11  ;;  %v1285_v49 = vmul.f32 %v1102_v43, %v271_v15  ;;  %vm1287_vm7 = vcmp.lt.f32.partialorder %v273_v6, 0.0004427343 }
  0x45   :  { %v719_v35 = vpop.eup %718  ;;  %v257_v57 = vsel %vm1241_vm5, %v1260_v36, %v1257_v51  ;;  %v1295_v19 = vmul.f32 0.6931472, %v715_v55  ;;  %720 = vlog2.f32 %v1274_v3  ;;  %v1299_v1 = vadd.f32 1.0, %v1130_v56 }
  0x46   :  { %v1302_v23 = vmul.f32 %v1113_v40, %v280_v59  ;;  %vm1304_vm8 = vcmp.lt.f32.partialorder %v282_v22, 0.0004427343  ;;  %v289_v7 = vadd.f32 1.0, %v288_v16  ;;  %v298_v11 = vadd.f32 1.0, %v297_v9 }
  0x47   :  { %v1308_v15 = vmul.f32 0.6931472, %v717_v42  ;;  %vm1310_vm9 = vcmp.lt.f32.partialorder %v291_v0, 0.0004427343  ;;  %722 = vlog2.f32 %v1299_v1  ;;  %v1316_v24 = vadd.f32 1.0, %v1141_v60 }
  0x48   :  { %v1318_v6 = vmul.f32 0.6931472, %v719_v35  ;;  %v300_v59 = vand.u32 2147483647, %v1130_v56  ;;  %v306_v51 = vmul.f32 -0.5, %v1141_v60  ;;  %v1323_v55 = vadd.f32 1.0, %v1149_v58 }
  0x49   :  { %724 = vlog2.f32 %v1316_v24  ;;  %v1327_v9 = vadd.f32 1.0, %v1157_v63  ;;  %v348_v22 = vadd.f32 %v212_v2, %v1081_v44  ;;  %v349_v16 = vadd.f32 %v221_v27, %v1086_v10 }
  0x4a   :  { %v266_v0 = vsel %vm1269_vm6, %v1282_v20, %v1295_v19  ;;  %v1336_v42 = vmul.f32 %v1122_v38, %v289_v7  ;;  %v1339_v35 = vmul.f32 %v1130_v56, %v298_v11  ;;  %726 = vlog2.f32 %v1323_v55 }
  0x4b   :  { %1748 = vst [vmem:[#allocation58_spill] sm:$0xff] %v1327_v9  ;;  %v721_v40 = vpop.eup %720  ;;  %v315_v10 = vmul.f32 -0.5, %v1149_v58  ;;  %728 = vlog2.f32 %v1327_v9  ;;  %v350_v44 = vadd.f32 %v230_v28, %v1089_v18  ;;  %vm1349_vm10 = vcmp.lt.f32.partialorder %v300_v59, 0.0004427343 }
  0x4c   :  { %v309_v12 = vand.u32 2147483647, %v1141_v60  ;;  %v324_v20 = vmul.f32 -0.5, %v1157_v63  ;;  %v1356_v19 = vadd.f32 1.0, %v1162_v30  ;;  %v284_v11 = vsel %vm1304_vm8, %v1302_v23, %v1318_v6  ;;  %v1766_v6 = vld [vmem:[#allocation57_spill] sm:$0xff] }
  0x4d   :  { %v723_v7 = vpop.eup %722  ;;  %v307_v2 = vadd.f32 1.0, %v306_v51  ;;  %v351_v18 = vadd.f32 %v239_v8, %v1094_v26  ;;  %v364_v28 = vadd.f32 %v349_v16, %v348_v22  ;;  %v287_v59 = vmul.f32 0.6931472, %v721_v40 }
  0x4e   :  { %1751 = vst [vmem:[#allocation59_spill] sm:$0xff] %v1356_v19  ;;  %v318_v56 = vand.u32 2147483647, %v1149_v58  ;;  %730 = vlog2.f32 %v1356_v19  ;;  %v1366_v38 = vadd.f32 1.0, %v1173_v45  ;;  %v316_v37 = vadd.f32 1.0, %v315_v10 }
  0x4f   :  { %v725_v43 = vpop.eup %724  ;;  %v333_v50 = vmul.f32 -0.5, %v1162_v30  ;;  %v352_v9 = vadd.f32 %v248_v25, %v1097_v31  ;;  %v365_v13 = vadd.f32 %v364_v28, %v350_v44  ;;  %vm1370_vm11 = vcmp.lt.f32.partialorder %v309_v12, 0.0004427343 }
  0x50   :  { %1752 = vst [vmem:[#allocation60_spill] sm:$0xff] %v1366_v38  ;;  %v727_v23 = vpop.eup %726  ;;  %v325_v26 = vadd.f32 1.0, %v324_v20  ;;  %732 = vlog2.f32 %v1366_v38  ;;  %v342_v40 = vmul.f32 -0.5, %v1173_v45  ;;  %v308_v51 = vmul.f32 %v1141_v60, %v307_v2 }
  0x51   :  { %v729_v8 = vpop.eup %728  ;;  %v327_v22 = vand.u32 2147483647, %v1157_v63  ;;  %v353_v16 = vadd.f32 %v257_v57, %v1100_v32  ;;  %v366_v10 = vadd.f32 %v365_v13, %v351_v18  ;;  %v293_v31 = vsel %vm1310_vm9, %v1336_v42, %v287_v59 }
  0x52   :  { %v296_v25 = vmul.f32 0.6931472, %v723_v7  ;;  %vm1382_vm12 = vcmp.lt.f32.partialorder %v318_v56, 0.0004427343  ;;  %v336_v12 = vand.u32 2147483647, %v1162_v30  ;;  %v317_v28 = vmul.f32 %v1149_v58, %v316_v37 }
  0x53   :  { %v305_v20 = vmul.f32 0.6931472, %v725_v43  ;;  %v334_v2 = vadd.f32 1.0, %v333_v50  ;;  %v367_v60 = vadd.f32 %v366_v10, %v352_v9  ;;  %v314_v19 = vmul.f32 0.6931472, %v727_v23  ;;  %v1773_v10 = vld [vmem:[#allocation40_spill] sm:$0xff] }
  0x54   :  { %v731_v38 = vpop.eup %730  ;;  %v323_v32 = vmul.f32 0.6931472, %v729_v8  ;;  %v326_v57 = vmul.f32 %v1157_v63, %v325_v26  ;;  %v343_v18 = vadd.f32 1.0, %v342_v40  ;;  %vm1389_vm13 = vcmp.lt.f32.partialorder %v327_v22, 0.0004427343  ;;  %v1767_v26 = vld [vmem:[#allocation55_spill] sm:$0xff] }
  0x55   :  { %v354_v56 = vadd.f32 %v266_v0, %v1105_v33  ;;  %v368_v42 = vadd.f32 %v367_v60, %v353_v16  ;;  %734 = vrcp.f32 %v1111_v54  ;;  %v302_v37 = vsel %vm1349_vm10, %v1339_v35, %v296_v25  ;;  %v1770_v8 = vld [vmem:[#allocation14_spill] sm:$0xff]  ;;  %v1772_v22 = vld [vmem:[#allocation39_spill] sm:$0xff] }
  0x56   :  { %v733_v43 = vpop.eup %732  ;;  %vm1398_vm14 = vcmp.lt.f32.partialorder %v336_v12, 0.0004427343  ;;  %v345_v9 = vand.u32 2147483647, %v1173_v45  ;;  %736 = vrcp.f32 %v1126_v53  ;;  %v311_v7 = vsel %vm1370_vm11, %v308_v51, %v305_v20  ;;  %v1771_v51 = vld [vmem:[#allocation15_spill] sm:$0xff]  ;;  %v1774_v12 = vld [vmem:[#allocation16_spill] sm:$0xff] }
  0x57   :  { %v332_v33 = vmul.f32 0.6931472, %v731_v38  ;;  %v335_v60 = vmul.f32 %v1162_v30, %v334_v2  ;;  %738 = vrcp.f32 %v1139_v52  ;;  %v320_v54 = vsel %vm1382_vm12, %v317_v28, %v314_v19  ;;  %v1775_v20 = vld [vmem:[#allocation17_spill] sm:$0xff] }
  0x58   :  { %v329_v0 = vsel %vm1389_vm13, %v326_v57, %v323_v32  ;;  %v344_v35 = vmul.f32 %v1173_v45, %v343_v18  ;;  %740 = vrcp.f32 %v1155_v48  ;;  %v341_v27 = vmul.f32 0.6931472, %v733_v43  ;;  %v1777_v32 = vld [vmem:[#allocation19_spill] sm:$0xff]  ;;  %v1778_v57 = vld [vmem:[#allocation41_spill] sm:$0xff] }
  0x59   :  { %v1761_v38 = vsel %vm1287_vm7, %v1285_v49, %v1308_v15  ;;  %v369_v59 = vadd.f32 %v368_v42, %v354_v56  ;;  %742 = vrcp.f32 %v1160_v17  ;;  %v1762_v52 = vmax.f32 %v967_v34, 0.0  ;;  %v1779_v56 = vld [vmem:[#allocation20_spill] sm:$0xff]  ;;  %v1780_v42 = vld [vmem:[#allocation21_spill] sm:$0xff]  ;;  %v1781_v43 = vld [vmem:[#allocation43_spill] sm:$0xff] }
  0x5a   :  { %v355_v53 = vadd.f32 %v1761_v38, %v1108_v39  ;;  %vm1424_vm15 = vcmp.lt.f32.partialorder %v345_v9, 0.0004427343  ;;  %v356_v48 = vadd.f32 %v284_v11, %v1116_v46  ;;  %744 = vrcp.f32 %v1168_v21  ;;  %v1765_v46 = vld [vmem:[#allocation56_spill] sm:$0xff]  ;;  %v1782_v9 = vld [vmem:[#allocation47_spill] sm:$0xff] }
  0x5b   :  { %v203_v19 = vsub.f32 %v1762_v52, %v1074_v29  ;;  %v735_v41 = vpop.eup %734  ;;  %v338_v49 = vsel %vm1398_vm14, %v335_v60, %v332_v33  ;;  %v357_v39 = vadd.f32 %v293_v31, %v1119_v47  ;;  %v1434_v17 = vadd.f32 %v302_v37, %v1133_v61  ;;  %v1786_v38 = vld [vmem:[#allocation27_spill] sm:$0xff] }
  0x5c   :  { %746 = vrcp.f32 %v1205_v4  ;;  %v737_v29 = vpop.eup %736  ;;  %v1438_v15 = vadd.f32 %v311_v7, %v1136_v5  ;;  %v1441_v23 = vadd.f32 %v320_v54, %v1143_v14  ;;  %v1444_v21 = vadd.f32 %v329_v0, %v1145_v62  ;;  %v1768_v5 = vld [vmem:[#allocation12_spill] sm:$0xff]  ;;  %v1769_v14 = vld [vmem:[#allocation13_spill] sm:$0xff]  ;;  %v1783_v54 = vld [vmem:[#allocation58_spill] sm:$0xff] }
  0x5d   :  { %748 = vrcp.f32 %v1765_v46  ;;  %v739_v11 = vpop.eup %738  ;;  %v347_v47 = vsel %vm1424_vm15, %v344_v35, %v341_v27  ;;  %v370_v61 = vadd.f32 %v369_v59, %v355_v53  ;;  %v1451_v40 = vadd.f32 %v338_v49, %v1767_v26  ;;  %v1785_v35 = vld [vmem:[#allocation26_spill] sm:$0xff]  ;;  %v1787_v52 = vld [vmem:[#allocation59_spill] sm:$0xff] }
  0x5e   :  { %750 = vrcp.f32 %v1766_v6  ;;  %v741_v4 = vpop.eup %740  ;;  %vm425_vm0 = vcmp.ge.f32.partialorder %v1768_v5, 0.0  ;;  %vm426_vm1 = vcmp.ge.f32.partialorder %v1769_v14, 0.0  ;;  %vm427_vm2 = vcmp.ge.f32.partialorder %v1770_v8, 0.0  ;;  %v1790_v49 = vld [vmem:[#allocation22_spill] sm:$0xff]  ;;  %v1793_v26 = vld [vmem:[#allocation51_spill] sm:$0xff]  ;;  %v1794_v14 = vld [vmem:[#allocation52_spill] sm:$0xff] }
  0x5f   :  { %752 = vrcp.f32 %v1274_v3  ;;  %v743_v62 = vpop.eup %742  ;;  %vm428_vm3 = vcmp.ge.f32.partialorder %v1771_v51, 0.0  ;;  %v441_v16 = vmul.f32 %v735_v41, %v1772_v22  ;;  %v442_v31 = vmul.f32 %v737_v29, %v1773_v10  ;;  %v1776_v3 = vld [vmem:[#allocation18_spill] sm:$0xff] }
  0x60   :  { %v745_v25 = vpop.eup %744  ;;  %v1460_v44 = vadd.f32 %v347_v47, %v203_v19  ;;  %vm429_vm4 = vcmp.ge.f32.partialorder %v1774_v12, 0.0  ;;  %vm430_vm5 = vcmp.ge.f32.partialorder %v1775_v20, 0.0  ;;  %vm431_vm6 = vcmp.ge.f32.partialorder %v1776_v3, 0.0  ;;  %v1795_v8 = vld [vmem:[#allocation30_spill] sm:$0xff]  ;;  %v1799_v20 = vld [vmem:[#allocation32_spill] sm:$0xff] }
  0x61   :  { %v371_v2 = vadd.f32 %v370_v61, %v356_v48  ;;  %754 = vrcp.f32 %v1299_v1  ;;  %vm432_vm7 = vcmp.ge.f32.partialorder %v1777_v32, 0.0  ;;  %v443_v18 = vmul.f32 %v739_v11, %v1778_v57  ;;  %v1486_v48 = vld [vmem:[#allocation7] sm:$0xff]  ;;  %v1792_v61 = vld [vmem:[#allocation29_spill] sm:$0xff] }
  0x62   :  { %v747_v28 = vpop.eup %746  ;;  %756 = vrcp.f32 %v1316_v24  ;;  %vm433_vm8 = vcmp.ge.f32.partialorder %v1779_v56, 0.0  ;;  %vm434_vm9 = vcmp.ge.f32.partialorder %v1780_v42, 0.0  ;;  %v444_v37 = vmul.f32 %v741_v4, %v1781_v43  ;;  %v1784_v24 = vld [vmem:[#allocation48_spill] sm:$0xff] }
  0x63   :  { %v749_v36 = vpop.eup %748  ;;  %758 = vrcp.f32 %v1323_v55  ;;  %v445_v7 = vmul.f32 %v743_v62, %v1782_v9  ;;  %v457_v1 = vsel %vm425_vm0, %v735_v41, %v441_v16  ;;  %v458_v33 = vsel %vm426_vm1, %v737_v29, %v442_v31  ;;  %v1788_v55 = vld [vmem:[#allocation49_spill] sm:$0xff]  ;;  %v1789_v41 = vld [vmem:[#allocation60_spill] sm:$0xff]  ;;  %v1791_v29 = vld [vmem:[#allocation50_spill] sm:$0xff] }
  0x64   :  { %v751_v50 = vpop.eup %750  ;;  %760 = vrcp.f32 %v1783_v54  ;;  %v446_v0 = vmul.f32 %v745_v25, %v1784_v24  ;;  %v473_v27 = vmul.f32 %v457_v1, %v1785_v35  ;;  %v474_v53 = vmul.f32 %v458_v33, %v1786_v38  ;;  %v1796_v31 = vld [vmem:[#allocation23_spill] sm:$0xff]  ;;  %v1805_v42 = vld [vmem:[#allocation28_spill] sm:$0xff] }
  0x65   :  { %v753_v60 = vpop.eup %752  ;;  %v372_v59 = vadd.f32 %v371_v2, %v357_v39  ;;  %762 = vrcp.f32 %v1787_v52  ;;  %v447_v19 = vmul.f32 %v747_v28, %v1788_v55  ;;  %v459_v13 = vsel %vm427_vm2, %v739_v11, %v443_v18 }
  0x66   :  { %764 = vrcp.f32 %v1789_v41  ;;  %vm435_vm10 = vcmp.ge.f32.partialorder %v1790_v49, 0.0  ;;  %v448_v46 = vmul.f32 %v749_v36, %v1791_v29  ;;  %v460_v47 = vsel %vm428_vm3, %v741_v4, %v444_v37  ;;  %v1797_v37 = vld [vmem:[#allocation31_spill] sm:$0xff] }
  0x67   :  { %v475_v39 = vmul.f32 %v459_v13, %v1792_v61  ;;  %v755_v6 = vpop.eup %754  ;;  %v449_v5 = vmul.f32 %v751_v50, %v1793_v26  ;;  %v450_v22 = vmul.f32 %v753_v60, %v1794_v14  ;;  %v461_v11 = vsel %vm429_vm4, %v743_v62, %v445_v7  ;;  %v1804_v14 = vld [vmem:[#allocation25_spill] sm:$0xff] }
  0x68   :  { %v476_v16 = vmul.f32 %v460_v47, %v1795_v8  ;;  %v757_v10 = vpop.eup %756  ;;  %vm436_vm11 = vcmp.ge.f32.partialorder %v1796_v31, 0.0  ;;  %v489_v2 = vadd.f32 %v474_v53, %v473_v27  ;;  %v511_v57 = vadd.f32 %v458_v33, %v457_v1  ;;  %v1798_v27 = vld [vmem:[#allocation53_spill] sm:$0xff] }
  0x69   :  { %v532_v4 = vadd.f32 %v1786_v38, %v1785_v35  ;;  %v573_v51 = vmax.f32 %v1486_v48, 0.0  ;;  %v1503_v18 = vpop.eup %758  ;;  %v373_v43 = vadd.f32 %v372_v59, %v1434_v17  ;;  %v462_v12 = vsel %vm430_vm5, %v745_v25, %v446_v0  ;;  %v1800_v0 = vld [vmem:[#allocation24_spill] sm:$0xff] }
  0x6a   :  { %v463_v62 = vsel %vm431_vm6, %v747_v28, %v447_v19  ;;  %v477_v9 = vmul.f32 %v461_v11, %v1797_v37  ;;  %v1511_v7 = vpop.eup %760  ;;  %v490_v1 = vadd.f32 %v489_v2, %v475_v39  ;;  %v512_v33 = vadd.f32 %v511_v57, %v459_v13  ;;  %v1801_v13 = vld [vmem:[#allocation54_spill] sm:$0xff]  ;;  %v1806_v2 = vld [vmem:[#allocation35_spill] sm:$0xff] }
  0x6b   :  { %v533_v54 = vadd.f32 %v532_v4, %v1792_v61  ;;  %v574_v24 = vmul.f32 0.5, %v573_v51  ;;  %v1514_v35 = vpop.eup %762  ;;  %v451_v38 = vmul.f32 %v755_v6, %v1798_v27  ;;  %v464_v17 = vsel %vm432_vm7, %v749_v36, %v448_v46  ;;  %v1802_v36 = vld [vmem:[#allocation33_spill] sm:$0xff]  ;;  %v1803_v39 = vld [vmem:[#allocation34_spill] sm:$0xff] }
  0x6c   :  { %v465_v25 = vsel %vm433_vm8, %v751_v50, %v449_v5  ;;  %v478_v3 = vmul.f32 %v462_v12, %v1799_v20  ;;  %v1522_v28 = vpop.eup %764  ;;  %vm437_vm12 = vcmp.ge.f32.partialorder %v1800_v0, 0.0  ;;  %v491_v53 = vadd.f32 %v490_v1, %v476_v16 }
  0x6d   :  { %v513_v59 = vadd.f32 %v512_v33, %v460_v47  ;;  %v534_v52 = vadd.f32 %v533_v54, %v1795_v8  ;;  %v576_v55 = vrot.slane %v574_v24, 2  ;;  %v374_v19 = vadd.f32 %v373_v43, %v1438_v15 }
  0x6e   :  { %v452_v41 = vmul.f32 %v757_v10, %v1801_v13  ;;  %v466_v32 = vsel %vm434_vm9, %v753_v60, %v450_v22  ;;  %v479_v56 = vmul.f32 %v463_v62, %v1802_v36  ;;  %v492_v50 = vadd.f32 %v491_v53, %v477_v9  ;;  %v1809_v13 = vld [vmem:[#allocation38_spill] sm:$0xff] }
  0x6f   :  { %v514_v29 = vadd.f32 %v513_v59, %v461_v11  ;;  %v535_v46 = vadd.f32 %v534_v52, %v1797_v37  ;;  %v578_v61 = vsub.f32 %v1486_v48, %v576_v55  ;;  %v453_v47 = vmul.f32 %v1503_v18, %v1149_v58 }
  0x70   :  { %v480_v26 = vmul.f32 %v464_v17, %v1803_v39  ;;  %v579_v15 = vadd.f32 %v576_v55, %v1486_v48  ;;  %v581_v5 = vrot.slane %v573_v51, 1  ;;  %vm438_vm13 = vcmp.ge.f32.partialorder %v1804_v14, 0.0 }
  0x71   :  { %vm439_vm14 = vcmp.ge.f32.partialorder %v1805_v42, 0.0  ;;  %v493_v60 = vadd.f32 %v492_v50, %v478_v3  ;;  %v515_v22 = vadd.f32 %v514_v29, %v462_v12  ;;  %v536_v11 = vadd.f32 %v535_v46, %v1799_v20 }
  0x72   :  { %v585_v8 = vrot.slane %v578_v61, 4  ;;  %v454_v16 = vmul.f32 %v1511_v7, %v1157_v63  ;;  %v467_v58 = vsel %vm435_vm10, %v755_v6, %v451_v38  ;;  %v481_v57 = vmul.f32 %v465_v25, %v1806_v2  ;;  %v1807_v63 = vld [vmem:[#allocation36_spill] sm:$0xff] }
  0x73   :  { %v589_v4 = vrot.slane %v579_v15, 4  ;;  %v494_v43 = vadd.f32 %v493_v60, %v479_v56  ;;  %v516_v37 = vadd.f32 %v515_v22, %v463_v62  ;;  %v537_v9 = vadd.f32 %v536_v11, %v1802_v36 }
  0x74   :  { %v587_v1 = vmax.f32 %v578_v61, %v585_v8  ;;  %v375_v33 = vadd.f32 %v374_v19, %v1441_v23  ;;  %v468_v12 = vsel %vm436_vm11, %v757_v10, %v452_v41  ;;  %v583_v54 = vmul.f32 %v581_v5, %v573_v51  ;;  %v1808_v23 = vld [vmem:[#allocation37_spill] sm:$0xff] }
  0x75   :  { %v591_v24 = vmin.f32 %v579_v15, %v589_v4  ;;  %vm440_vm15 = vcmp.ge.f32.partialorder %v967_v34, 0.0  ;;  %v482_v49 = vmul.f32 %v466_v32, %v1807_v63  ;;  %v495_v6 = vadd.f32 %v494_v43, %v480_v26 }
  0x76   :  { %v517_v27 = vadd.f32 %v516_v37, %v464_v17  ;;  %v538_v38 = vadd.f32 %v537_v9, %v1803_v39  ;;  %v455_v62 = vmul.f32 %v1514_v35, %v1162_v30  ;;  %v612_v3 = vmin.f32 %v578_v61, %v585_v8  ;;  %v1810_v61 = vld [vmem:[#allocation42_spill] sm:$0xff] }
  0x77   :  { %v592_v20 = vsub.f32 %v591_v24, %v587_v1  ;;  %v613_v53 = vmax.f32 %v579_v15, %v589_v4  ;;  %v483_v59 = vmul.f32 %v467_v58, %v1808_v23  ;;  %v496_v31 = vadd.f32 %v495_v6, %v481_v57  ;;  %v1811_v15 = vld [vmem:[#allocation44_spill] sm:$0xff]  ;;  %v1813_v9 = vld [vmem:[#allocation46_spill] sm:$0xff] }
  0x78   :  { %v518_v10 = vadd.f32 %v517_v27, %v465_v25  ;;  %v539_v51 = vadd.f32 %v538_v38, %v1806_v2  ;;  %v456_v52 = vmul.f32 %v1522_v28, %v1173_v45  ;;  %v469_v17 = vsel %vm437_vm12, %v1503_v18, %v453_v47 }
  0x79   :  { %v593_v55 = vmax.f32 %v592_v20, 0.0  ;;  %v599_v19 = vrot.slane %v583_v54, 4  ;;  %v484_v30 = vmul.f32 %v468_v12, %v1809_v13  ;;  %v497_v41 = vadd.f32 %v496_v31, %v482_v49 }
  0x7a   :  { %v519_v36 = vadd.f32 %v518_v10, %v466_v32  ;;  %v540_v56 = vadd.f32 %v539_v51, %v1807_v63  ;;  %v376_v50 = vadd.f32 %v375_v33, %v1444_v21  ;;  %v561_v25 = vrot.slane %v1486_v48, 4 }
  0x7b   :  { %v595_v29 = vrot.slane %v593_v55, 1  ;;  %v614_v46 = vsub.f32 %v613_v53, %v612_v3  ;;  %v485_v45 = vmul.f32 %v469_v17, %v1810_v61  ;;  %v498_v39 = vadd.f32 %v497_v41, %v483_v59 }
  0x7c   :  { %v520_v26 = vadd.f32 %v519_v36, %v467_v58  ;;  %v541_v18 = vadd.f32 %v540_v56, %v1808_v23  ;;  %v470_v0 = vsel %vm438_vm13, %v1511_v7, %v454_v16  ;;  %v471_v32 = vsel %vm439_vm14, %v1514_v35, %v455_v62  ;;  %v1812_v16 = vld [vmem:[#allocation45_spill] sm:$0xff] }
  0x7d   :  { %v1573_v47 = vmul.f32 %v595_v29, %v593_v55  ;;  %v601_v21 = vadd.f32 %v599_v19, %v583_v54  ;;  %v486_v5 = vmul.f32 %v470_v0, %v1811_v15  ;;  %v499_v60 = vadd.f32 %v498_v39, %v484_v30 }
  0x7e   :  { %v521_v22 = vadd.f32 %v520_v26, %v468_v12  ;;  %v542_v11 = vadd.f32 %v541_v18, %v1809_v13  ;;  %v377_v8 = vadd.f32 %v376_v50, %v1451_v40  ;;  %v563_v58 = vsub.f32 %v1486_v48, %v561_v25 }
  0x7f   :  { %v603_v14 = vrot.slane %v1573_v47, 6  ;;  %v616_v7 = vrot.slane %v614_v46, 1  ;;  %v487_v2 = vmul.f32 %v471_v32, %v1812_v16  ;;  %v500_v42 = vadd.f32 %v499_v60, %v485_v45 }
  0x80   :  { %v522_v35 = vadd.f32 %v521_v22, %v469_v17  ;;  %v543_v57 = vadd.f32 %v542_v11, %v1810_v61  ;;  %v881_v4 = vmov 128.0   ;;  %v472_v43 = vsel %vm440_vm15, %v1522_v28, %v456_v52 }
  0x81   :  { %766 = vrcp.f32 %v881_v4  ;;  %v605_v37 = vsub.f32 %v601_v21, %v603_v14  ;;  %v488_v40 = vmul.f32 %v472_v43, %v1813_v9  ;;  %v501_v1 = vadd.f32 %v500_v42, %v486_v5 }
  0x82   :  { %v523_v48 = vadd.f32 %v522_v35, %v470_v0  ;;  %v544_v33 = vadd.f32 %v543_v57, %v1811_v15  ;;  %v378_v12 = vadd.f32 %v377_v8, %v1460_v44  ;;  %v564_v54 = vand.u32 2147483647, %v563_v58 }
  0x83   :  { %vm565_vm0 = vcmask 1043456   ;;  %v618_v24 = vmul.f32 %v616_v7, %v614_v46  ;;  %v502_v63 = vadd.f32 %v501_v1, %v487_v2  ;;  %v606_v27 = vadd.f32 1e-07, %v605_v37 }
  0x84   :  { %v524_v49 = vadd.f32 %v523_v48, %v471_v32  ;;  %v545_v6 = vadd.f32 %v544_v33, %v1812_v16  ;;  %v379_v20 = vrot.slane %v378_v12, 4  ;;  %v566_v3 = vsel %vm565_vm0, %v564_v54, 0.0 }
  0x85   :  { %v503_v38 = vadd.f32 %v502_v63, %v488_v40  ;;  %v623_v53 = vadd.f32 1e-07, %v618_v24  ;;  %768 = vrcp.f32 %v606_v27  ;;  %v567_v55 = vrot.slane %v566_v3, 4 }
  0x86   :  { %v525_v34 = vadd.f32 %v524_v49, %v472_v43  ;;  %v546_v28 = vadd.f32 %v545_v6, %v1813_v9  ;;  %v380_v52 = vadd.f32 %v379_v20, %v378_v12  ;;  %v620_v41 = vrot.slane %v605_v37, 2 }
  0x87   :  { %v767_v62 = vpop.eup %766  ;;  %v504_v23 = vrot.slane %v503_v38, 4  ;;  %770 = vrcp.f32 %v623_v53  ;;  %v568_v26 = vadd.f32 %v567_v55, %v566_v3  ;;  %vm631_vm2 = vcmask 1040384  }
  0x88   :  { %v526_v59 = vrot.slane %v525_v34, 4  ;;  %v547_v44 = vrot.slane %v546_v28, 4  ;;  %v386_v17 = vmul.f32 128.0, %v767_v62  ;;  %v381_v29 = vrot.slane %v380_v52, 2 }
  0x89   :  { %v505_v31 = vadd.f32 %v504_v23, %v503_v38  ;;  %v622_v0 = vsub.f32 %v618_v24, %v620_v41  ;;  %v569_v8 = vrot.slane %v568_v26, 2  ;;  %vm390_vm1 = vweird.f32 %v767_v62 }
  0x8a   :  { %v527_v10 = vadd.f32 %v526_v59, %v525_v34  ;;  %v548_v51 = vadd.f32 %v547_v44, %v546_v28  ;;  %v387_v46 = vsub.f32 1.0, %v386_v17  ;;  %v382_v5 = vadd.f32 %v381_v29, %v380_v52 }
  0x8b   :  { %v506_v19 = vrot.slane %v505_v31, 2  ;;  %v769_v36 = vpop.eup %768  ;;  %v570_v35 = vadd.f32 %v569_v8, %v568_v26  ;;  %vm633_vm3 = vcmask 1041408   ;;  %vm635_vm4 = vcmask 1042432  }
  0x8c   :  { %v528_v13 = vrot.slane %v527_v10, 2  ;;  %v549_v30 = vrot.slane %v548_v51, 2  ;;  %v609_v18 = vrot.slane %v769_v36, 2  ;;  %v388_v22 = vmul.f32 %v767_v62, %v387_v46 }
  0x8d   :  { %v507_v56 = vadd.f32 %v506_v19, %v505_v31  ;;  %v771_v32 = vpop.eup %770  ;;  %v383_v16 = vrot.slane %v382_v5, 1  ;;  %v571_v9 = vrot.slane %v570_v35, 1  ;;  %vm638_vm5 = vcmask 1044480  }
  0x8e   :  { %v529_v50 = vadd.f32 %v528_v13, %v527_v10  ;;  %v550_v25 = vadd.f32 %v549_v30, %v548_v51  ;;  %v611_v58 = vmul.f32 %v609_v18, %v1573_v47  ;;  %v625_v14 = vmul.f32 %v771_v32, %v622_v0 }
  0x8f   :  { %v508_v61 = vrot.slane %v507_v56, 1  ;;  %v389_v42 = vadd.f32 %v767_v62, %v388_v22  ;;  %v384_v4 = vadd.f32 %v383_v16, %v382_v5  ;;  %v572_v12 = vadd.f32 %v571_v9, %v570_v35 }
  0x90   :  { %v530_v45 = vrot.slane %v529_v50, 1  ;;  %v551_v39 = vrot.slane %v550_v25, 1  ;;  %v626_v57 = vsub.f32 %v611_v58, %v625_v14  ;;  %vm640_vm6 = vcmask 1045504  }
  0x91   :  { %v509_v60 = vadd.f32 %v508_v61, %v507_v56  ;;  %v391_v37 = vsel %vm390_vm1, %v767_v62, %v389_v42  ;;  %vm642_vm7 = vcmask 1046528  }
  0x92   :  { %v531_v21 = vadd.f32 %v530_v45, %v529_v50  ;;  %v552_v15 = vadd.f32 %v551_v39, %v550_v25  ;;  %v627_v40 = vsub.f32 1.0, %v626_v57  ;;  %v392_v48 = vmul.f32 %v391_v37, %v384_v4 }
  0x93   :  { %v510_v2 = vmul.f32 2.0, %v509_v60 }
  0x94   :  { %v553_v11 = vadd.f32 %v552_v15, %v531_v21  ;;  %v629_v54 = vrot.slane %v627_v40, 5 }
  0x95   :  { %v554_v43 = vadd.f32 1.0, %v510_v2 }
  0x96   :  { %v555_v7 = vadd.f32 1.0, %v553_v11 }
  0x98   :  { %772 = vrcp.f32 %v555_v7 }
  0x9e   :  { %v773_v1 = vpop.eup %772 }
  0x9f   :  { %v557_v33 = vmul.f32 %v773_v1, %v554_v43 }
  0xa1   :  { %v558_v47 = vsub.f32 1.0, %v557_v33 }
  0xa3   :  { %v632_v24 = vsel %vm631_vm2, %v392_v48, %v558_v47 }
  0xa4   :  { %v634_v63 = vsel %vm633_vm3, %v632_v24, %v572_v12 }
  0xa5   :  { %v636_v49 = vsel %vm635_vm4, %v634_v63, %v629_v54 }
  0xa6   :  { %v637_v6 = vsel %vm565_vm0, %v636_v49, 0.0 }
  0xa7   :  { %v639_v27 = vsel %vm638_vm5, %v637_v6, 0.0 }
  0xa8   :  { %v641_v38 = vsel %vm640_vm6, %v639_v27, 0.0 }
  0xa9   :  { %v643_v34 = vsel %vm642_vm7, %v641_v38, 0.0 }
  0xaa   :  { %644 = vst [vmem:[#allocation8] sm:$0xff] %v643_v34 }
  0xab   :  { %655 = dma.vmem_to_hbm [thread:$0]  %s651_s2, 128, %s653_s30, [#allocation4]  }
  0xac   :  { %874 = dma.done.wait [#allocation4], 128  }
  0xad   :  { %875 = vsyncadd [#allocation4], 4294967168 }
  0xae   :  { %660 = vsyncpa [#allocation3], 1 }
  0xaf   :  { %661 = vsyncpa [#allocation6], 1 }
  0xb0   :  { %662 = vsyncpa [#allocation4], 1 }

</bundles_post_ra>
